<compile_context>
chip_gen: v7x
topology: tpu7x:2x2x1
jax: 0.10.0
libtpu: 0.0.40
codegen_flags: <defaults>
</compile_context>

<pallas_src>
import jax
import jax.numpy as jnp
from jax.experimental import pallas as pl
from jax.experimental.pallas import tpu as pltpu


def _translate_kernel(x_ref, off_ref, sel_ref, o_ref):
    # x_ref:   (TB, N*D)  lane-dense block of flattened fibers
    # off_ref: (TB, D)    per-fiber translation offsets for this block
    # sel_ref: (D,  N*D)  0/1 selection rows: sel[d, j] == 1  <=>  j % D == d
    # o_ref:   (TB, N*D)  translated fibers
    tb, nd = x_ref.shape
    d = off_ref.shape[1]

    off = off_ref[...]          # (TB, D)
    sel = sel_ref[...]          # (D, N*D), same dtype as x

    # Build the per-fiber flattened offset row once per block (no inner loop):
    # off_row[b, j] = off[b, j % D].  Exact (0/1 masks), VPU-only, hidden under
    # the memory-bound slack.
    off_row = (jnp.broadcast_to(off[:, 0:1], (tb, nd)) *
               jnp.broadcast_to(sel[0:1, :], (tb, nd)))
    for k in range(1, d):       # D is tiny (3); unrolled at trace time
        off_row = off_row + (jnp.broadcast_to(off[:, k:k + 1], (tb, nd)) *
                             jnp.broadcast_to(sel[k:k + 1, :], (tb, nd)))

    o_ref[...] = x_ref[...] + off_row


def translate_fibers(x, translate_range, key, *, target_block_bytes=2 * 1024 * 1024):
    """Translate each fiber by a random offset in [-translate_range, translate_range]."""
    B, N, D = x.shape
    ND = N * D
    dtype = x.dtype

    # Per-fiber random offsets (identical draw to a (B, 1, D) uniform).
    offsets = jax.random.uniform(
        key, (B, 1, D), dtype=dtype,
        minval=-translate_range, maxval=translate_range)
    off2 = offsets.reshape(B, D)

    # Lane-dense view of the points: (B, N*D) — a free contiguous reshape.
    x2 = x.reshape(B, ND)

    # Tiny 0/1 selection rows (D x N*D): column j has a 1 at row j % D.
    sel = jnp.tile(jnp.eye(D, dtype=dtype), (1, N))

    # Fibers per block: target ~2 MiB per input block, sublane-aligned
    # (8 rows for 4-byte dtypes, 16 for bf16, 32 for int8/fp8).
    itemsize = jnp.dtype(dtype).itemsize
    sublane = {4: 8, 2: 16, 1: 32}.get(itemsize, 8)
    row_bytes = ND * itemsize
    tb = max(1, target_block_bytes // row_bytes)
    if tb >= B:
        tb = B                                   # single block covers the batch
    else:
        tb = max(sublane, (tb // sublane) * sublane)
        tb = min(tb, B)
    grid = (pl.cdiv(B, tb),)

    out2 = pl.pallas_call(
        _translate_kernel,
        out_shape=jax.ShapeDtypeStruct((B, ND), dtype),
        grid=grid,
        in_specs=[
            pl.BlockSpec((tb, ND), lambda i: (i, 0)),   # fibers (lane-dense)
            pl.BlockSpec((tb, D), lambda i: (i, 0)),    # per-fiber offsets (tiny)
            pl.BlockSpec((D, ND), lambda i: (0, 0)),    # resident selection rows
        ],
        out_specs=pl.BlockSpec((tb, ND), lambda i: (i, 0)),
        compiler_params=pltpu.CompilerParams(
            dimension_semantics=("parallel",)),
    )(x2, off2, sel)

    return out2.reshape(B, N, D), offsets


class Translate:
    """JAX/Pallas equivalent of the PyTorch Translate augmentation module."""

    def __init__(self, translate_range):
        self.translate_range = translate_range

    def __call__(self, x, key):
        out, _ = translate_fibers(x, self.translate_range, key)
        return out


if __name__ == "__main__":
    key = jax.random.PRNGKey(0)
    kx, koff = jax.random.split(key)

    # Small fiber batch: 16 fibers, 128 points each, 3-D coordinates.
    B, N, D = 16, 128, 3
    x = jax.random.normal(kx, (B, N, D), dtype=jnp.float32)
    translate_range = 0.25

    module = Translate(translate_range)
    out = jax.block_until_ready(module(x, koff))

    # Pure-JAX reference with the same deterministic offsets.
    ref_off = jax.random.uniform(koff, (B, 1, D), dtype=x.dtype,
                                 minval=-translate_range, maxval=translate_range)
    ref = x + ref_off

    assert out.shape == x.shape and out.dtype == x.dtype
    assert jnp.allclose(out, ref, atol=1e-6, rtol=1e-6)

    # Also exercise the multi-block (grid > 1) tiling path.
    out_tiled, _ = translate_fibers(x, translate_range, koff, target_block_bytes=1024)
    out_tiled = jax.block_until_ready(out_tiled)
    assert jnp.allclose(out_tiled, ref, atol=1e-6, rtol=1e-6)

    print("KERNEL_OK")
</pallas_src>

<mosaic_0001>
module attributes {stable_mosaic.version = 11 : i64} {
  func.func @_translate_kernel(%arg0: i32, %arg1: memref<16x384xf32, #tpu.memory_space<vmem>>, %arg2: memref<16x3xf32, #tpu.memory_space<vmem>>, %arg3: memref<3x384xf32, #tpu.memory_space<vmem>>, %arg4: memref<16x384xf32, #tpu.memory_space<vmem>>) attributes {dimension_semantics = [#tpu.dimension_semantics<parallel>], iteration_bounds = array<i64: 1>, scalar_prefetch = 0 : i64, scratch_operands = 0 : i64, tpu.core_type = #tpu.core_type<tc>, window_params = [{transform_indices = @transform_0, window_bounds = array<i64: 16, 384>}, {transform_indices = @transform_1, window_bounds = array<i64: 16, 3>}, {pipeline_mode = #tpu.pipeline_mode<synchronous>, transform_indices = @transform_2, window_bounds = array<i64: 3, 384>}, {transform_indices = @transform_3, window_bounds = array<i64: 16, 384>}]} {
    %c0 = arith.constant 0 : index
    %c0_0 = arith.constant 0 : index
    %0 = vector.load %arg2[%c0, %c0_0] : memref<16x3xf32, #tpu.memory_space<vmem>>, vector<16x3xf32>
    %c0_1 = arith.constant 0 : index
    %c0_2 = arith.constant 0 : index
    %1 = vector.load %arg3[%c0_1, %c0_2] : memref<3x384xf32, #tpu.memory_space<vmem>>, vector<3x384xf32>
    %2 = vector.extract_strided_slice %0 {offsets = [0, 0], sizes = [16, 1], strides = [1, 1]} : vector<16x3xf32> to vector<16x1xf32>
    %3 = vector.shape_cast %2 : vector<16x1xf32> to vector<16x1xf32>
    %4 = vector.broadcast %3 : vector<16x1xf32> to vector<16x384xf32>
    %5 = vector.extract_strided_slice %1 {offsets = [0, 0], sizes = [1, 384], strides = [1, 1]} : vector<3x384xf32> to vector<1x384xf32>
    %6 = vector.shape_cast %5 : vector<1x384xf32> to vector<1x384xf32>
    %7 = vector.broadcast %6 : vector<1x384xf32> to vector<16x384xf32>
    %8 = arith.mulf %4, %7 : vector<16x384xf32>
    %9 = vector.extract_strided_slice %0 {offsets = [0, 1], sizes = [16, 1], strides = [1, 1]} : vector<16x3xf32> to vector<16x1xf32>
    %10 = vector.shape_cast %9 : vector<16x1xf32> to vector<16x1xf32>
    %11 = vector.broadcast %10 : vector<16x1xf32> to vector<16x384xf32>
    %12 = vector.extract_strided_slice %1 {offsets = [1, 0], sizes = [1, 384], strides = [1, 1]} : vector<3x384xf32> to vector<1x384xf32>
    %13 = vector.shape_cast %12 : vector<1x384xf32> to vector<1x384xf32>
    %14 = vector.broadcast %13 : vector<1x384xf32> to vector<16x384xf32>
    %15 = arith.mulf %11, %14 : vector<16x384xf32>
    %16 = arith.addf %8, %15 : vector<16x384xf32>
    %17 = vector.extract_strided_slice %0 {offsets = [0, 2], sizes = [16, 1], strides = [1, 1]} : vector<16x3xf32> to vector<16x1xf32>
    %18 = vector.shape_cast %17 : vector<16x1xf32> to vector<16x1xf32>
    %19 = vector.broadcast %18 : vector<16x1xf32> to vector<16x384xf32>
    %20 = vector.extract_strided_slice %1 {offsets = [2, 0], sizes = [1, 384], strides = [1, 1]} : vector<3x384xf32> to vector<1x384xf32>
    %21 = vector.shape_cast %20 : vector<1x384xf32> to vector<1x384xf32>
    %22 = vector.broadcast %21 : vector<1x384xf32> to vector<16x384xf32>
    %23 = arith.mulf %19, %22 : vector<16x384xf32>
    %24 = arith.addf %16, %23 : vector<16x384xf32>
    %c0_3 = arith.constant 0 : index
    %c0_4 = arith.constant 0 : index
    %25 = vector.load %arg1[%c0_3, %c0_4] : memref<16x384xf32, #tpu.memory_space<vmem>>, vector<16x384xf32>
    %26 = arith.addf %25, %24 : vector<16x384xf32>
    %c0_5 = arith.constant 0 : index
    %c0_6 = arith.constant 0 : index
    %27 = vector.load %arg4[%c0_5, %c0_6] : memref<16x384xf32, #tpu.memory_space<vmem>>, vector<16x384xf32>
    tpu.vector_store %arg4[%c0_5, %c0_6], %26 {strides = array<i32>} : memref<16x384xf32, #tpu.memory_space<vmem>>, vector<16x384xf32>,
    return
  }
  func.func @transform_0(%arg0: i32) -> (i32, i32) {
    %c0_i32 = arith.constant 0 : i32
    %c0_i32_0 = arith.constant 0 : i32
    return %arg0, %c0_i32 : i32, i32
  }
  func.func @transform_1(%arg0: i32) -> (i32, i32) {
    %c0_i32 = arith.constant 0 : i32
    %c0_i32_0 = arith.constant 0 : i32
    return %arg0, %c0_i32 : i32, i32
  }
  func.func @transform_2(%arg0: i32) -> (i32, i32) {
    %c0_i32 = arith.constant 0 : i32
    %c0_i32_0 = arith.constant 0 : i32
    %c0_i32_1 = arith.constant 0 : i32
    return %c0_i32, %c0_i32_0 : i32, i32
  }
  func.func @transform_3(%arg0: i32) -> (i32, i32) {
    %c0_i32 = arith.constant 0 : i32
    %c0_i32_0 = arith.constant 0 : i32
    return %arg0, %c0_i32 : i32, i32
  }
}

</mosaic_0001>

<bundles_post_ra>
// kernel: tpu_custom_call.1
= control target key start
LH: loop header
LB: loop body
LE: loop exit
PB: predicated region body
PF: predicated region fallthrough
CT: control target
= control target key end

     0   :  { %8 = vsyncpa [#allocation3], 0  ;;  %s335_s0 = inlined_call_operand.hbm [shape: f32[16,384], index: 0, kind: input, shape index: {}]   ;;  %s336_s1 = inlined_call_operand.vmem [shape: f32[16,3], index: 1, kind: input, shape index: {}]   ;;  %s337_s2 = inlined_call_operand.vmem [shape: f32[3,384], index: 2, kind: input, shape index: {}]   ;;  %s338_s3 = inlined_call_operand.hbm [shape: f32[16,384], index: 3, kind: output, shape index: {}]  }
   0x1   :  { %9 = vsyncpa [#allocation4], 0  ;;  %s266_s12 = smov [#allocation2]   ;;  %s218_s16 = scalar_lea.hbm %s335_s0, 768 }
   0x2   :  { %s15_s13 = sshll.u32 %s266_s12, 4  ;;  %p219_p0 = scmp.ne.s32.totalorder %s335_s0, %s218_s16  ;;  %s16_s13 = int_to_ptr.vmem [resolvable:$true] %s15_s13 }
   0x3   :  { %p222_p1 = scmp.lt.u32.totalorder %s218_s16, %s335_s0 }
   0x5   :  { %p224_p2 = pnand %p222_p1, %p219_p0 }
   0x7   :  { %227 = shalt.err (!%p224_p2)
}
   0x8   :  { %s228_s21 = scalar_lea.vmem %s16_s13, 768  ;;  %p233_p4 = scmp.lt.s32.totalorder %s16_s13, %s16_s13 }
   0x9   :  { %p229_p3 = scmp.ne.s32.totalorder %s16_s13, %s228_s21  ;;  %p234_p5 = scmp.lt.s32.totalorder %s228_s21, %s228_s21 }
   0xb   :  { %p235_p6 = por %p234_p5, %p233_p4 }
   0xd   :  { %p236_p7 = pnand %p235_p6, %p229_p3 }
   0xf   :  { %239 = shalt.err (!%p236_p7)
}
  0x10   :  { %s267_s22 = smov 384   ;;  %s268_s23 = smov 24  }
  0x11   :  { %21 = dma.hbm_to_vmem [thread:$0]  %s335_s0, 768, %s16_s13, [#allocation3], %s267_s22, %s267_s22, %s268_s23  }
  0x12   :  { %262 = dma.done.wait [#allocation3], 768  }
  0x13   :  { %263 = vsyncadd [#allocation3], 4294966528  ;;  %v269_v0 = vmov 1   ;;  %v270_v1 = vmov 0   ;;  %v29_v2 = vld [vmem:[%s336_s1] sm:$0xff]  ;;  %v30_v3 = vld [vmem:[%s336_s1 + $0x8] sm:$0xff]  ;;  %v45_v5 = vlaneseq }
  0x14   :  { %215 = vset.pattern.permute.xlu1 %v269_v0  ;;  %214 = vset.pattern.permute.xlu0 %v270_v1  ;;  %v271_v4 = vmov 2   ;;  %v31_v9 = vld [vmem:[%s337_s2] sm:$0x77]  ;;  %v32_v12 = vld [vmem:[%s337_s2 + $0x8] sm:$0x7]  ;;  %v175_v55 = vld [vmem:[#allocation2 + $0x18] sm:$0xff] }
  0x15   :  { %79 = vperm.xlu1 %215, %v29_v2   ;;  %35 = vperm.xlu0 %214, %v29_v2   ;;  %v46_v6 = vshrl.u32 %v45_v5, 7  ;;  %v176_v62 = vld [vmem:[#allocation2 + $0x20] sm:$0xff]  ;;  %v177_v63 = vld [vmem:[#allocation2 + $0x28] sm:$0xff]  ;;  %s272_s1 = smov [#allocation5]  }
  0x16   :  { %v172_v0 = vld [vmem:[#allocation2] sm:$0xff]  ;;  %s195_s2 = sshll.u32 %s272_s1, 4  ;;  %s196_s2 = int_to_ptr.vmem [resolvable:$true] %s195_s2 }
  0x17   :  { %v88_v7 = vsub.s32 1, %v46_v6  ;;  %v47_v8 = vsub.s32 0, %v46_v6  ;;  %v92_v10 = vsub.s32 5, %v46_v6  ;;  %v51_v11 = vsub.s32 4, %v46_v6  ;;  %s240_s6 = scalar_lea.vmem %s196_s2, 768  ;;  %p245_p9 = scmp.lt.s32.totalorder %s196_s2, %s196_s2 }
  0x18   :  { %v135_v15 = vsub.s32 2, %v46_v6  ;;  %v139_v16 = vsub.s32 6, %v46_v6  ;;  %v173_v6 = vld [vmem:[#allocation2 + $0x8] sm:$0xff]  ;;  %p241_p8 = scmp.ne.s32.totalorder %s196_s2, %s240_s6  ;;  %p246_p10 = scmp.lt.s32.totalorder %s240_s6, %s240_s6 }
  0x19   :  { %83 = vperm.xlu1 %215, %v30_v3   ;;  %40 = vperm.xlu0 %214, %v30_v3   ;;  %v89_v13 = vrot.slane %v31_v9, %v88_v7  ;;  %v48_v14 = vrot.slane %v31_v9, %v47_v8  ;;  %v93_v17 = vrot.slane %v31_v9, %v92_v10 }
  0x1a   :  { %v97_v18 = vrot.slane %v32_v12, %v88_v7  ;;  %v52_v19 = vrot.slane %v31_v9, %v51_v11  ;;  %v56_v20 = vrot.slane %v32_v12, %v47_v8  ;;  %v136_v25 = vrot.slane %v31_v9, %v135_v15  ;;  %p247_p11 = por %p246_p10, %p245_p9 }
  0x1b   :  { %v104_v21 = vrot.slane %v89_v13, %v88_v7  ;;  %v63_v23 = vrot.slane %v48_v14, %v47_v8  ;;  %v140_v26 = vrot.slane %v31_v9, %v139_v16  ;;  %v144_v27 = vrot.slane %v32_v12, %v135_v15 }
  0x1c   :  { %v108_v28 = vrot.slane %v93_v17, %v88_v7  ;;  %v112_v29 = vrot.slane %v97_v18, %v88_v7  ;;  %v67_v30 = vrot.slane %v52_v19, %v47_v8  ;;  %v71_v31 = vrot.slane %v56_v20, %v47_v8  ;;  %v174_v7 = vld [vmem:[#allocation2 + $0x10] sm:$0xff]  ;;  %p248_p12 = pnand %p247_p11, %p241_p8 }
  0x1d   :  { %217 = vset.pattern.permute.xlu1 %v271_v4  ;;  %216 = vset.pattern.permute.xlu0 %v271_v4  ;;  %v151_v36 = vrot.slane %v136_v25, %v135_v15  ;;  %v155_v43 = vrot.slane %v140_v26, %v135_v15  ;;  %v159_v44 = vrot.slane %v144_v27, %v135_v15 }
  0x1e   :  { %130 = vperm.xlu1 %217, %v30_v3   ;;  %126 = vperm.xlu0 %216, %v29_v2  }
  0x94   :  { %v80_v22 = vpop.permute.xlu1 %79  ;;  %v36_v24 = vpop.permute.xlu0 %35 }
  0x95   :  { %v113_v32 = vmul.f32 %v104_v21, %v80_v22  ;;  %v72_v33 = vmul.f32 %v63_v23, %v36_v24  ;;  %v114_v45 = vmul.f32 %v108_v28, %v80_v22  ;;  %v115_v46 = vmul.f32 %v112_v29, %v80_v22 }
  0x96   :  { %v73_v47 = vmul.f32 %v67_v30, %v36_v24  ;;  %v74_v48 = vmul.f32 %v71_v31, %v36_v24 }
  0x97   :  { %v119_v49 = vadd.f32 %v113_v32, %v72_v33 }
  0x98   :  { %v84_v34 = vpop.permute.xlu1 %83  ;;  %v41_v35 = vpop.permute.xlu0 %40  ;;  %v120_v60 = vadd.f32 %v114_v45, %v73_v47  ;;  %v121_v61 = vadd.f32 %v115_v46, %v74_v48 }
  0x99   :  { %v116_v37 = vmul.f32 %v104_v21, %v84_v34  ;;  %v117_v38 = vmul.f32 %v108_v28, %v84_v34  ;;  %v118_v39 = vmul.f32 %v112_v29, %v84_v34  ;;  %v75_v40 = vmul.f32 %v63_v23, %v41_v35 }
  0x9a   :  { %v76_v41 = vmul.f32 %v67_v30, %v41_v35  ;;  %v77_v42 = vmul.f32 %v71_v31, %v41_v35 }
  0x9b   :  { %v122_v50 = vadd.f32 %v116_v37, %v75_v40 }
  0x9c   :  { %v123_v51 = vadd.f32 %v117_v38, %v76_v41  ;;  %v124_v52 = vadd.f32 %v118_v39, %v77_v42 }
  0x9d   :  { %v131_v53 = vpop.permute.xlu1 %130  ;;  %v127_v54 = vpop.permute.xlu0 %126 }
  0x9e   :  { %v163_v56 = vmul.f32 %v151_v36, %v131_v53  ;;  %v164_v57 = vmul.f32 %v155_v43, %v131_v53  ;;  %v165_v58 = vmul.f32 %v159_v44, %v131_v53  ;;  %v160_v59 = vmul.f32 %v151_v36, %v127_v54 }
  0x9f   :  { %v161_v1 = vmul.f32 %v155_v43, %v127_v54  ;;  %v162_v2 = vmul.f32 %v159_v44, %v127_v54 }
  0xa0   :  { %v169_v3 = vadd.f32 %v163_v56, %v122_v50  ;;  %v170_v4 = vadd.f32 %v164_v57, %v123_v51  ;;  %v171_v5 = vadd.f32 %v165_v58, %v124_v52  ;;  %v166_v8 = vadd.f32 %v160_v59, %v119_v49 }
  0xa1   :  { %v167_v9 = vadd.f32 %v161_v1, %v120_v60  ;;  %v168_v10 = vadd.f32 %v162_v2, %v121_v61 }
  0xa2   :  { %v181_v11 = vadd.f32 %v175_v55, %v169_v3  ;;  %v182_v12 = vadd.f32 %v176_v62, %v170_v4  ;;  %v183_v13 = vadd.f32 %v177_v63, %v171_v5  ;;  %v178_v14 = vadd.f32 %v172_v0, %v166_v8 }
  0xa3   :  { %v179_v15 = vadd.f32 %v173_v6, %v167_v9  ;;  %v180_v16 = vadd.f32 %v174_v7, %v168_v10 }
  0xa4   :  { %187 = vst [vmem:[#allocation5 + $0x18] sm:$0xff] %v181_v11  ;;  %188 = vst [vmem:[#allocation5 + $0x20] sm:$0xff] %v182_v12 }
  0xa5   :  { %189 = vst [vmem:[#allocation5 + $0x28] sm:$0xff] %v183_v13  ;;  %184 = vst [vmem:[#allocation5] sm:$0xff] %v178_v14 }
  0xa6   :  { %185 = vst [vmem:[#allocation5 + $0x8] sm:$0xff] %v179_v15  ;;  %186 = vst [vmem:[#allocation5 + $0x10] sm:$0xff] %v180_v16 }
  0xa7   :  { %251 = shalt.err (!%p248_p12)
}
  0xa8   :  { %s252_s9 = scalar_lea.hbm %s338_s3, 768 }
  0xa9   :  { %p253_p13 = scmp.ne.s32.totalorder %s338_s3, %s252_s9  ;;  %p256_p0 = scmp.lt.u32.totalorder %s252_s9, %s338_s3 }
  0xab   :  { %p258_p1 = pnand %p256_p0, %p253_p13 }
  0xad   :  { %261 = shalt.err (!%p258_p1)
}
  0xae   :  { %201 = dma.vmem_to_hbm [thread:$0]  %s196_s2, 768, %s338_s3, [#allocation4], %s267_s22, %s267_s22, %s268_s23  }
  0xaf   :  { %264 = dma.done.wait [#allocation4], 768  }
  0xb0   :  { %265 = vsyncadd [#allocation4], 4294966528 }
  0xb1   :  { %205 = vsyncpa [#allocation3], 1 }
  0xb2   :  { %206 = vsyncpa [#allocation4], 1 }

</bundles_post_ra>
